<compile_context>
chip_gen: v7x
topology: tpu7x:2x2x1
jax: 0.10.0
libtpu: 0.0.40
codegen_flags: <defaults>
</compile_context>

<pallas_src>
import functools

import jax
import jax.numpy as jnp
from jax.experimental import pallas as pl
from jax.experimental.pallas import tpu as pltpu


def _prediction_tox21_kernel(h_ref, m_ref,
                             w1_ref, b1_ref, w2_ref, b2_ref,
                             w3_ref, b3_ref, w4_ref, b4_ref,
                             pred_ref, outh_ref, *, n_nodes):
    TM = h_ref.shape[0]
    G = TM // n_nodes                       # whole graphs in this node tile
    H = w1_ref.shape[1]

    # node_dec Linear1 + SiLU. h is loaded as f32 and cast to bf16 in-register
    # for the MXU; accumulation and the SiLU / mask math stay in f32.
    h16 = h_ref[...].astype(jnp.bfloat16)
    t = jnp.dot(h16, w1_ref[...],
                preferred_element_type=jnp.float32) + b1_ref[...]
    t = t * jax.nn.sigmoid(t)                                   # SiLU (f32)

    m = m_ref[...]                                              # (TM, 1) f32
    xm = t * m                                                  # masked, f32

    # Per-graph pooling: reshape + sublane sum (no dense one-hot matmul).
    s = jnp.sum(xm.reshape(G, n_nodes, H), axis=1)              # (G, H)
    c = jnp.sum(m.reshape(G, n_nodes, 1), axis=1)               # (G, 1) counts

    # node_dec Linear2 hoisted past mask + segment-sum (tiny, kept f32 so the
    # pooled sum is not rounded to bf16).
    hi = jax.lax.Precision.HIGHEST
    out_h = jnp.dot(s, w2_ref[...], precision=hi,
                    preferred_element_type=jnp.float32) + c * b2_ref[...]
    outh_ref[...] = out_h

    # graph_dec: Linear -> SiLU -> Linear(H, 2). Only G rows -> f32 throughout.
    g = jnp.dot(out_h, w3_ref[...], precision=hi,
                preferred_element_type=jnp.float32) + b3_ref[...]
    g = g * jax.nn.sigmoid(g)
    pred_ref[...] = jnp.dot(g, w4_ref[...], precision=hi,
                            preferred_element_type=jnp.float32) + b4_ref[...]


def _vmem_budget_bytes():
    """Per-generation VMEM budget (v7x-safe default of 64 MiB physical)."""
    cap = 64 * 1024 * 1024
    try:
        cap = int(pltpu.get_tpu_info().vmem_capacity_bytes)
    except Exception:
        pass
    return min(int(cap * 0.6), 96 * 1024 * 1024)


def _max_rows_for_budget(budget_bytes, in_nf, hidden_nf):
    """Max node rows per tile given the VMEM budget (lane-padded estimates)."""
    lane = 128
    in_p = -(-in_nf // lane) * lane
    h_p = -(-hidden_nf // lane) * lane
    # double-buffered f32 h tile + double-buffered mask + ~3 f32 (TM,H) temps
    per_row = 2 * in_p * 4 + 2 * lane * 4 + 3 * h_p * 4
    usable = max(budget_bytes - (2 << 20), per_row)   # slack for weights/outs
    rows = usable // per_row
    return max(8, (rows // 8) * 8)


def _pick_graphs_per_tile(B, n_nodes, max_rows):
    """Largest divisor of B whose tile satisfies the TPU sublane constraint,
    fits the VMEM-derived row budget, and (preferably) yields >= 2 grid steps
    so both v7x TensorCores get work."""
    divs = sorted((d for d in range(1, B + 1) if B % d == 0), reverse=True)

    def legal(g):
        tm = g * n_nodes
        return ((tm % 8 == 0 or g == B) and (g % 8 == 0 or g == B))

    fitting = [g for g in divs if legal(g) and g * n_nodes <= max_rows]
    multi = [g for g in fitting if B // g >= 2]
    if multi:
        return multi[0]
    if fitting:
        return fitting[0]
    # Last resort: any legal tiling (full-array tile is always legal).
    return next(g for g in divs if legal(g))


def prediction_tox21(h, node_mask, n_nodes, params, *, rows_per_tile=None):
    """JAX/Pallas equivalent of PredictionTox21.forward.

    h:         (B*n_nodes, in_nf) float32
    node_mask: (B*n_nodes, 1)     float32
    returns:   (pred (B, 2), out_h (B, hidden_nf))  float32
    """
    N, in_nf = h.shape
    assert N % n_nodes == 0
    B = N // n_nodes
    H = params["w1"].shape[1]
    n_out = params["w4"].shape[1]

    budget = _vmem_budget_bytes()
    max_rows = _max_rows_for_budget(budget, in_nf, H)
    if rows_per_tile is not None:
        max_rows = min(max_rows, max(rows_per_tile, n_nodes))

    gpt = _pick_graphs_per_tile(B, n_nodes, max_rows)
    TM = gpt * n_nodes
    num_tiles = B // gpt

    # Only w1 feeds a bf16 MXU pass; it is tiny, cast once in the wrapper.
    w1 = params["w1"].astype(jnp.bfloat16)
    w2, w3, w4 = params["w2"], params["w3"], params["w4"]
    b1, b2, b3, b4 = (params[k] for k in ("b1", "b2", "b3", "b4"))

    kernel = functools.partial(_prediction_tox21_kernel, n_nodes=n_nodes)

    def resident(a):
        zeros = (0,) * a.ndim
        return pl.BlockSpec(a.shape, lambda i, _z=zeros: _z)

    pred, out_h = pl.pallas_call(
        kernel,
        out_shape=(jax.ShapeDtypeStruct((B, n_out), jnp.float32),
                   jax.ShapeDtypeStruct((B, H), jnp.float32)),
        grid=(num_tiles,),
        in_specs=[
            pl.BlockSpec((TM, in_nf), lambda i: (i, 0)),   # h (f32 node tile)
            pl.BlockSpec((TM, 1), lambda i: (i, 0)),       # node_mask
            resident(w1), resident(b1),                    # weights resident
            resident(w2), resident(b2),
            resident(w3), resident(b3),
            resident(w4), resident(b4),
        ],
        out_specs=(pl.BlockSpec((gpt, n_out), lambda i: (i, 0)),
                   pl.BlockSpec((gpt, H), lambda i: (i, 0))),
        compiler_params=pltpu.CompilerParams(
            dimension_semantics=("parallel",),
            vmem_limit_bytes=int(budget)),
    )(h.astype(jnp.float32), node_mask.astype(jnp.float32),
      w1, b1, w2, b2, w3, b3, w4, b4)

    # PyTorch: pred.squeeze(1) is a no-op on the size-2 output dim.
    return pred, out_h


def init_params(key, in_nf, hidden_nf, n_out=2):
    """Deterministic PyTorch-Linear-style init; weights stored as (in, out)."""
    def linear(key, fan_in, fan_out):
        kw, kb = jax.random.split(key)
        bound = 1.0 / jnp.sqrt(fan_in)
        w = jax.random.uniform(kw, (fan_in, fan_out), jnp.float32,
                               -bound, bound)
        b = jax.random.uniform(kb, (1, fan_out), jnp.float32, -bound, bound)
        return w, b

    k1, k2, k3, k4 = jax.random.split(key, 4)
    w1, b1 = linear(k1, in_nf, hidden_nf)       # node_dec Linear 1
    w2, b2 = linear(k2, hidden_nf, hidden_nf)   # node_dec Linear 2
    w3, b3 = linear(k3, hidden_nf, hidden_nf)   # graph_dec Linear 1
    w4, b4 = linear(k4, hidden_nf, n_out)       # graph_dec Linear 2 -> 2 outs
    return dict(w1=w1, b1=b1, w2=w2, b2=b2, w3=w3, b3=b3, w4=w4, b4=b4)


def prediction_tox21_ref(h, node_mask, n_nodes, params):
    """Pure-JAX f32 reference mirroring the PyTorch forward exactly."""
    def silu(x):
        return x * jax.nn.sigmoid(x)
    x = silu(h @ params["w1"] + params["b1"]) @ params["w2"] + params["b2"]
    x = x * node_mask
    out_h = x.reshape(-1, n_nodes, x.shape[-1]).sum(axis=1)
    pred = silu(out_h @ params["w3"] + params["b3"]) @ params["w4"] + params["b4"]
    return pred, out_h


if __name__ == "__main__":
    B, n_nodes, in_nf, hidden_nf = 16, 8, 16, 32
    N = B * n_nodes

    key = jax.random.PRNGKey(0)
    k_h, k_m, k_p = jax.random.split(key, 3)

    h = jax.random.normal(k_h, (N, in_nf), jnp.float32)
    node_mask = (jax.random.uniform(k_m, (N, 1)) > 0.2).astype(jnp.float32)
    params = init_params(k_p, in_nf, hidden_nf)

    # Default tiling prefers >= 2 grid steps (here: 2 tiles of 8 graphs each).
    pred, out_h = prediction_tox21(h, node_mask, n_nodes, params)
    pred = jax.block_until_ready(pred)
    out_h = jax.block_until_ready(out_h)

    pred_ref, outh_ref = prediction_tox21_ref(h, node_mask, n_nodes, params)

    assert pred.shape == (B, 2) and out_h.shape == (B, hidden_nf)
    # Only the node Linear1 runs in bf16; everything downstream is f32.
    assert jnp.allclose(pred, pred_ref, atol=3e-2, rtol=3e-2)
    assert jnp.allclose(out_h, outh_ref, atol=3e-2, rtol=3e-2)

    print("KERNEL_OK")
</pallas_src>

<mosaic_0001>
module attributes {stable_mosaic.version = 11 : i64} {
  func.func @_prediction_tox21_kernel(%arg0: i32, %arg1: memref<64x16xf32, #tpu.memory_space<vmem>>, %arg2: memref<64x1xf32, #tpu.memory_space<vmem>>, %arg3: memref<16x32xbf16, #tpu.memory_space<vmem>>, %arg4: memref<1x32xf32, #tpu.memory_space<vmem>>, %arg5: memref<32x32xf32, #tpu.memory_space<vmem>>, %arg6: memref<1x32xf32, #tpu.memory_space<vmem>>, %arg7: memref<32x32xf32, #tpu.memory_space<vmem>>, %arg8: memref<1x32xf32, #tpu.memory_space<vmem>>, %arg9: memref<32x2xf32, #tpu.memory_space<vmem>>, %arg10: memref<1x2xf32, #tpu.memory_space<vmem>>, %arg11: memref<8x2xf32, #tpu.memory_space<vmem>>, %arg12: memref<8x32xf32, #tpu.memory_space<vmem>>) attributes {dimension_semantics = [#tpu.dimension_semantics<parallel>], iteration_bounds = array<i64: 2>, scalar_prefetch = 0 : i64, scratch_operands = 0 : i64, tpu.core_type = #tpu.core_type<tc>, window_params = [{transform_indices = @transform_0, window_bounds = array<i64: 64, 16>}, {transform_indices = @transform_1, window_bounds = array<i64: 64, 1>}, {pipeline_mode = #tpu.pipeline_mode<synchronous>, transform_indices = @transform_2, window_bounds = array<i64: 16, 32>}, {pipeline_mode = #tpu.pipeline_mode<synchronous>, transform_indices = @transform_3, window_bounds = array<i64: 1, 32>}, {pipeline_mode = #tpu.pipeline_mode<synchronous>, transform_indices = @transform_4, window_bounds = array<i64: 32, 32>}, {pipeline_mode = #tpu.pipeline_mode<synchronous>, transform_indices = @transform_5, window_bounds = array<i64: 1, 32>}, {pipeline_mode = #tpu.pipeline_mode<synchronous>, transform_indices = @transform_6, window_bounds = array<i64: 32, 32>}, {pipeline_mode = #tpu.pipeline_mode<synchronous>, transform_indices = @transform_7, window_bounds = array<i64: 1, 32>}, {pipeline_mode = #tpu.pipeline_mode<synchronous>, transform_indices = @transform_8, window_bounds = array<i64: 32, 2>}, {pipeline_mode = #tpu.pipeline_mode<synchronous>, transform_indices = @transform_9, window_bounds = array<i64: 1, 2>}, {transform_indices = @transform_10, window_bounds = array<i64: 8, 2>}, {transform_indices = @transform_11, window_bounds = array<i64: 8, 32>}]} {
    %c0 = arith.constant 0 : index
    %c0_0 = arith.constant 0 : index
    %0 = vector.load %arg1[%c0, %c0_0] : memref<64x16xf32, #tpu.memory_space<vmem>>, vector<64x16xf32>
    %1 = arith.truncf %0 : vector<64x16xf32> to vector<64x16xbf16>
    %c0_1 = arith.constant 0 : index
    %c0_2 = arith.constant 0 : index
    %2 = vector.load %arg3[%c0_1, %c0_2] : memref<16x32xbf16, #tpu.memory_space<vmem>>, vector<16x32xbf16>
    %cst = arith.constant dense<0.000000e+00> : vector<64x32xf32>
    %3 = tpu.matmul %1, %2, %cst {dimension_numbers = #tpu.dot_dimension_numbers<[1], [0], [0], [1], [0, 0, 1, 1], [], []>} : vector<64x16xbf16>, vector<16x32xbf16>, vector<64x32xf32> -> vector<64x32xf32>
    %c0_3 = arith.constant 0 : index
    %c0_4 = arith.constant 0 : index
    %4 = vector.load %arg4[%c0_3, %c0_4] : memref<1x32xf32, #tpu.memory_space<vmem>>, vector<1x32xf32>
    %5 = vector.broadcast %4 : vector<1x32xf32> to vector<64x32xf32>
    %6 = arith.addf %3, %5 : vector<64x32xf32>
    %7 = arith.negf %6 : vector<64x32xf32>
    %8 = math.exp %7 : vector<64x32xf32>
    %cst_5 = arith.constant 1.000000e+00 : f32
    %9 = vector.broadcast %cst_5 : f32 to vector<64x32xf32>
    %10 = arith.addf %9, %8 : vector<64x32xf32>
    %11 = arith.divf %9, %10 : vector<64x32xf32>
    %12 = arith.mulf %6, %11 : vector<64x32xf32>
    %c0_6 = arith.constant 0 : index
    %c0_7 = arith.constant 0 : index
    %13 = vector.load %arg2[%c0_6, %c0_7] : memref<64x1xf32, #tpu.memory_space<vmem>>, vector<64x1xf32>
    %14 = vector.broadcast %13 : vector<64x1xf32> to vector<64x32xf32>
    %15 = arith.mulf %12, %14 : vector<64x32xf32>
    %16 = vector.shape_cast %15 : vector<64x32xf32> to vector<8x8x32xf32>
    %cst_8 = arith.constant dense<0.000000e+00> : vector<8x32xf32>
    %17 = vector.multi_reduction <add>, %16, %cst_8 [1] : vector<8x8x32xf32> to vector<8x32xf32>
    %18 = vector.shape_cast %13 : vector<64x1xf32> to vector<8x8x1xf32>
    %cst_9 = arith.constant dense<0.000000e+00> : vector<8x1xf32>
    %19 = vector.multi_reduction <add>, %18, %cst_9 [1] : vector<8x8x1xf32> to vector<8x1xf32>
    %c0_10 = arith.constant 0 : index
    %c0_11 = arith.constant 0 : index
    %20 = vector.load %arg5[%c0_10, %c0_11] : memref<32x32xf32, #tpu.memory_space<vmem>>, vector<32x32xf32>
    %cst_12 = arith.constant dense<0.000000e+00> : vector<8x32xf32>
    %21 = tpu.matmul %17, %20, %cst_12 {dimension_numbers = #tpu.dot_dimension_numbers<[1], [0], [0], [1], [0, 0, 1, 1], [], []>, precision = #tpu.contract_precision<fp32>} : vector<8x32xf32>, vector<32x32xf32>, vector<8x32xf32> -> vector<8x32xf32>
    %c0_13 = arith.constant 0 : index
    %c0_14 = arith.constant 0 : index
    %22 = vector.load %arg6[%c0_13, %c0_14] : memref<1x32xf32, #tpu.memory_space<vmem>>, vector<1x32xf32>
    %23 = vector.broadcast %19 : vector<8x1xf32> to vector<8x32xf32>
    %24 = vector.broadcast %22 : vector<1x32xf32> to vector<8x32xf32>
    %25 = arith.mulf %23, %24 : vector<8x32xf32>
    %26 = arith.addf %21, %25 : vector<8x32xf32>
    %c0_15 = arith.constant 0 : index
    %c0_16 = arith.constant 0 : index
    %27 = vector.load %arg12[%c0_15, %c0_16] : memref<8x32xf32, #tpu.memory_space<vmem>>, vector<8x32xf32>
    tpu.vector_store %arg12[%c0_15, %c0_16], %26 {strides = array<i32>} : memref<8x32xf32, #tpu.memory_space<vmem>>, vector<8x32xf32>,
    %c0_17 = arith.constant 0 : index
    %c0_18 = arith.constant 0 : index
    %28 = vector.load %arg7[%c0_17, %c0_18] : memref<32x32xf32, #tpu.memory_space<vmem>>, vector<32x32xf32>
    %cst_19 = arith.constant dense<0.000000e+00> : vector<8x32xf32>
    %29 = tpu.matmul %26, %28, %cst_19 {dimension_numbers = #tpu.dot_dimension_numbers<[1], [0], [0], [1], [0, 0, 1, 1], [], []>, precision = #tpu.contract_precision<fp32>} : vector<8x32xf32>, vector<32x32xf32>, vector<8x32xf32> -> vector<8x32xf32>
    %c0_20 = arith.constant 0 : index
    %c0_21 = arith.constant 0 : index
    %30 = vector.load %arg8[%c0_20, %c0_21] : memref<1x32xf32, #tpu.memory_space<vmem>>, vector<1x32xf32>
    %31 = vector.broadcast %30 : vector<1x32xf32> to vector<8x32xf32>
    %32 = arith.addf %29, %31 : vector<8x32xf32>
    %33 = arith.negf %32 : vector<8x32xf32>
    %34 = math.exp %33 : vector<8x32xf32>
    %cst_22 = arith.constant 1.000000e+00 : f32
    %35 = vector.broadcast %cst_22 : f32 to vector<8x32xf32>
    %36 = arith.addf %35, %34 : vector<8x32xf32>
    %37 = arith.divf %35, %36 : vector<8x32xf32>
    %38 = arith.mulf %32, %37 : vector<8x32xf32>
    %c0_23 = arith.constant 0 : index
    %c0_24 = arith.constant 0 : index
    %39 = vector.load %arg9[%c0_23, %c0_24] : memref<32x2xf32, #tpu.memory_space<vmem>>, vector<32x2xf32>
    %cst_25 = arith.constant dense<0.000000e+00> : vector<8x2xf32>
    %40 = tpu.matmul %38, %39, %cst_25 {dimension_numbers = #tpu.dot_dimension_numbers<[1], [0], [0], [1], [0, 0, 1, 1], [], []>, precision = #tpu.contract_precision<fp32>} : vector<8x32xf32>, vector<32x2xf32>, vector<8x2xf32> -> vector<8x2xf32>
    %c0_26 = arith.constant 0 : index
    %c0_27 = arith.constant 0 : index
    %41 = vector.load %arg10[%c0_26, %c0_27] : memref<1x2xf32, #tpu.memory_space<vmem>>, vector<1x2xf32>
    %42 = vector.broadcast %41 : vector<1x2xf32> to vector<8x2xf32>
    %43 = arith.addf %40, %42 : vector<8x2xf32>
    %c0_28 = arith.constant 0 : index
    %c0_29 = arith.constant 0 : index
    %44 = vector.load %arg11[%c0_28, %c0_29] : memref<8x2xf32, #tpu.memory_space<vmem>>, vector<8x2xf32>
    tpu.vector_store %arg11[%c0_28, %c0_29], %43 {strides = array<i32>} : memref<8x2xf32, #tpu.memory_space<vmem>>, vector<8x2xf32>,
    return
  }
  func.func @transform_0(%arg0: i32) -> (i32, i32) {
    %c0_i32 = arith.constant 0 : i32
    %c0_i32_0 = arith.constant 0 : i32
    return %arg0, %c0_i32 : i32, i32
  }
  func.func @transform_1(%arg0: i32) -> (i32, i32) {
    %c0_i32 = arith.constant 0 : i32
    %c0_i32_0 = arith.constant 0 : i32
    return %arg0, %c0_i32 : i32, i32
  }
  func.func @transform_2(%arg0: i32) -> (i32, i32) {
    %c0_i32 = arith.constant 0 : i32
    %c0_i32_0 = arith.constant 0 : i32
    %c0_i32_1 = arith.constant 0 : i32
    return %c0_i32, %c0_i32_0 : i32, i32
  }
  func.func @transform_3(%arg0: i32) -> (i32, i32) {
    %c0_i32 = arith.constant 0 : i32
    %c0_i32_0 = arith.constant 0 : i32
    %c0_i32_1 = arith.constant 0 : i32
    return %c0_i32, %c0_i32_0 : i32, i32
  }
  func.func @transform_4(%arg0: i32) -> (i32, i32) {
    %c0_i32 = arith.constant 0 : i32
    %c0_i32_0 = arith.constant 0 : i32
    %c0_i32_1 = arith.constant 0 : i32
    return %c0_i32, %c0_i32_0 : i32, i32
  }
  func.func @transform_5(%arg0: i32) -> (i32, i32) {
    %c0_i32 = arith.constant 0 : i32
    %c0_i32_0 = arith.constant 0 : i32
    %c0_i32_1 = arith.constant 0 : i32
    return %c0_i32, %c0_i32_0 : i32, i32
  }
  func.func @transform_6(%arg0: i32) -> (i32, i32) {
    %c0_i32 = arith.constant 0 : i32
    %c0_i32_0 = arith.constant 0 : i32
    %c0_i32_1 = arith.constant 0 : i32
    return %c0_i32, %c0_i32_0 : i32, i32
  }
  func.func @transform_7(%arg0: i32) -> (i32, i32) {
    %c0_i32 = arith.constant 0 : i32
    %c0_i32_0 = arith.constant 0 : i32
    %c0_i32_1 = arith.constant 0 : i32
    return %c0_i32, %c0_i32_0 : i32, i32
  }
  func.func @transform_8(%arg0: i32) -> (i32, i32) {
    %c0_i32 = arith.constant 0 : i32
    %c0_i32_0 = arith.constant 0 : i32
    %c0_i32_1 = arith.constant 0 : i32
    return %c0_i32, %c0_i32_0 : i32, i32
  }
  func.func @transform_9(%arg0: i32) -> (i32, i32) {
    %c0_i32 = arith.constant 0 : i32
    %c0_i32_0 = arith.constant 0 : i32
    %c0_i32_1 = arith.constant 0 : i32
    return %c0_i32, %c0_i32_0 : i32, i32
  }
  func.func @transform_10(%arg0: i32) -> (i32, i32) {
    %c0_i32 = arith.constant 0 : i32
    %c0_i32_0 = arith.constant 0 : i32
    return %arg0, %c0_i32 : i32, i32
  }
  func.func @transform_11(%arg0: i32) -> (i32, i32) {
    %c0_i32 = arith.constant 0 : i32
    %c0_i32_0 = arith.constant 0 : i32
    return %arg0, %c0_i32 : i32, i32
  }
}

</mosaic_0001>

<bundles_post_ra>
// kernel: tpu_custom_call.1
= control target key start
LH: loop header
LB: loop body
LE: loop exit
PB: predicated region body
PF: predicated region fallthrough
CT: control target
= control target key end

     0   :  { %s3520_s0 = inlined_call_operand.vmem [shape: f32[128,16], index: 0, kind: input, shape index: {}]   ;;  %s3521_s1 = inlined_call_operand.vmem [shape: f32[128,1], index: 1, kind: input, shape index: {}]   ;;  %s3522_s2 = inlined_call_operand.vmem [shape: bf16[16,32], index: 2, kind: input, shape index: {}]   ;;  %s3523_s3 = inlined_call_operand.vmem [shape: f32[1,32], index: 3, kind: input, shape index: {}]   ;;  %s3524_s4 = inlined_call_operand.vmem [shape: f32[32,32], index: 4, kind: input, shape index: {}]   ;;  %s3525_s5 = inlined_call_operand.vmem [shape: f32[1,32], index: 5, kind: input, shape index: {}]   ;;  %s3526_s6 = inlined_call_operand.vmem [shape: f32[32,32], index: 6, kind: input, shape index: {}]   ;;  %s3527_s7 = inlined_call_operand.vmem [shape: f32[1,32], index: 7, kind: input, shape index: {}]   ;;  %s3528_s8 = inlined_call_operand.vmem [shape: f32[32,2], index: 8, kind: input, shape index: {}]   ;;  %s3529_s9 = inlined_call_operand.vmem [shape: f32[1,2], index: 9, kind: input, shape index: {}]   ;;  %s3530_s10 = inlined_call_operand.vmem [shape: f32[16,2], index: 10, kind: output, shape index: {0}]   ;;  %s3531_s11 = inlined_call_operand.hbm [shape: f32[16,32], index: 11, kind: output, shape index: {1}]  }
   0x1   :  { %3533 = sst [smem:[#allocation5_spill]] %s3520_s0 }
   0x2   :  { %3534 = sst [smem:[#allocation6_spill]] %s3521_s1 }
   0x3   :  { %3535 = sst [smem:[#allocation7_spill]] %s3522_s2 }
   0x4   :  { %17 = vsyncpa [#allocation3], 0 }
   0x5   :  { %19 = vsyncpa [#allocation3 + $0x1], 0  ;;  %s3153_s17 = smov 0   ;;  %s3155_s18 = smov 0  }
   0x6   :  { %s3157_s19 = smov 0   ;;  %s3159_s20 = smov 0  }
   0x7 LB: > { %s3174_s21 = sadd.s32 4294967295, %s3086_s20   ;;  %s2467_s22 = sadd.s32 4294967294, %s3086_s20   ;;  %s3086_s20 = sphi %s3159_s20, %s3545_s20   ;;  %s3082_s19 = sphi %s3157_s19, %s3544_s19   ;;  %s3078_s18 = sphi %s3155_s18, %s3543_s18   ;;  %s3074_s17 = sphi %s3153_s17, %s3542_s17  }
   0x8   : > { %s3178_s23 = sadd.s32 1, %s3086_s20   ;;  %s278_s24 = sadd.s32 1, %s3082_s19 }
   0x9   : > { %s275_s25 = ssub.s32 %s3086_s20, %s3178_s23  ;;  %p288_p0 = scmp.ne.s32.totalorder %s3082_s19, %s3078_s18 }
   0xa   : > { %p276_p1 = scmp.eq.s32.totalorder %s275_s25, 0  ;;  %p289_p2 = scmp.eq.s32.totalorder %s3174_s21, 1 }
   0xb   : > { %p294_p3 = scmp.ne.s32.totalorder %s3078_s18, %s3074_s17  ;;  %p295_p4 = scmp.eq.s32.totalorder %s2467_s22, 1 }
   0xc   : > { %s3189_s26 = scalar_select %p276_p1, %s3082_s19, %s278_s24  }
   0xd   : > { %p3191_p5 = por %p289_p2, %p288_p0  ;;  %p3195_p6 = por %p295_p4, %p294_p3 }
   0xe   : > { %p2470_p7 = scmp.ge.s32.totalorder %s3086_s20, 1  ;;  %p355_p8 = scmp.lt.s32.totalorder %s3086_s20, 3 }
  0x10   : > { %p356_p9 = pnand %p2470_p7, %p355_p8 }
  0x11   : > { %s3538_s2 = sld [smem:[#allocation7_spill]] (!%p356_p9)  ;;  %s2472_s12 = sshll.u32 (!%p356_p9), %s3174_s21, 3  ;;  %v3088_v1 = vmov (!%p356_p9), 0   ;;  %vm448_vm0 = vcmask (!%p356_p9), 130048   ;;  %vm695_vm1 = vcmask (!%p356_p9), 7168   ;;  %vm3090_vm2 = vmmov (!%p356_p9), 0  }
  0x12   : > { %359 = sbr.rel (%p356_p9) target bundleno = 1105 (0x451), region = 60  ;;  %p405_p10 = scmp.lt.s32.totalorder (!%p356_p9), %s2472_s12, 15  ;;  %2985 = vset.pattern.permute.xlu0 (!%p356_p9), %v3088_v1  ;;  %2986 = vset.pattern.permute.xlu1 (!%p356_p9), %v3088_v1  ;;  %vm638_vm3 = vcmask (!%p356_p9), 261120   ;;  %vm819_vm4 = vcmask (!%p356_p9), 1041409   ;;  %vm821_vm5 = vcmask (!%p356_p9), 1042434   ;;  %vm823_vm6 = vcmask (!%p356_p9), 1043459  }
  0x13   : > { %s3539_s0 = sld [smem:[#allocation5_spill]] (!%p356_p9)  ;;  %s3540_s1 = sld [smem:[#allocation6_spill]] (!%p356_p9)  ;;  %vm825_vm7 = vcmask (!%p356_p9), 1044484   ;;  %vm827_vm8 = vcmask (!%p356_p9), 1045509   ;;  %vm829_vm9 = vcmask (!%p356_p9), 1046534   ;;  %vm831_vm10 = vcmask (!%p356_p9), 1047559  }
  0x14   : > { %s3532_s29 = sand.u32 (!%p356_p9), 1, %s3078_s18   ;;  %s2496_s14 = sshll.u32 (!%p356_p9), %s3174_s21, 7 }
  0x15   : > { %s3388_s30 = sshll.u32 (!%p356_p9), %s3532_s29, 3  ;;  %s3472_s22 = scalar_lea.hbm (!%p356_p9), %s3531_s11, %s2496_s14 }
  0x17   : > { %v2987_v0 = vld [vmem:[%s3538_s2] sm:$0xff] (!%p356_p9)  }
  0x18   : > { %2594 = vmatprep.subr.bf16.mxu0 (!%p356_p9), %v2987_v0 }
  0x19   : > { %2595 = vmatpush3.bf16.msra.mxu0 %v2987_v0  ;;  %s3547_s12 = smov (!%p405_p10, %s2472_s12), 15 }
  0x1a   : > { %s2473_s13 = sshll.u32 %s3547_s12, 3  ;;  %s403_s12 = scalar_lea.vmem [#allocation2], %s3388_s30 }
  0x1b   : > { %s408_s16 = scalar_lea.vmem %s3539_s0, %s2473_s13  ;;  %s3211_s25 = scalar_lea.vmem %s3540_s1, %s2473_s13 }
  0x1c   : > { %v421_v2 = vld [vmem:[%s408_s16] sm:$0xff]  ;;  %v422_v3 = vld [vmem:[%s408_s16 + $0x8] sm:$0xff]  ;;  %v423_v4 = vld [vmem:[%s408_s16 + $0x10] sm:$0xff]  ;;  %s2372_s24 = sshll.u32 %s403_s12, 4  ;;  %s3092_s0 = smov [#allocation2]   ;;  %s2373_s24 = int_to_ptr.vmem [resolvable:$true] %s2372_s24 }
  0x1d   : > { %v429_v5 = vpack.c.bf16 %v422_v3, %v421_v2  ;;  %v424_v6 = vld [vmem:[%s408_s16 + $0x18] sm:$0xff]  ;;  %v425_v7 = vld [vmem:[%s408_s16 + $0x20] sm:$0xff]  ;;  %v426_v8 = vld [vmem:[%s408_s16 + $0x28] sm:$0xff]  ;;  %s3024_s13 = scalar_lea.vmem %s2373_s24, 128  ;;  %s3028_s1 = sshll.u32 %s3092_s0, 4  ;;  %s3029_s1 = int_to_ptr.vmem [resolvable:$false] %s3028_s1 }
  0x1e   : > { %v430_v9 = vpack.c.bf16 %v424_v6, %v423_v4  ;;  %v431_v10 = vpack.c.bf16 %v426_v8, %v425_v7  ;;  %v427_v11 = vld [vmem:[%s408_s16 + $0x30] sm:$0xff]  ;;  %v428_v12 = vld [vmem:[%s408_s16 + $0x38] sm:$0xff]  ;;  %v582_v13 = vld [vmem:[%s3211_s25] sm:$0xff]  ;;  %p3025_p11 = scmp.ne.s32.totalorder %s2373_s24, %s3024_s13  ;;  %s3030_s2 = scalar_lea.vmem %s3029_s1, 256 }
  0x1f   : > { %2596 = vmatprep.mubr.msk.bf16.mxu0 %vm448_vm0, %v429_v5  ;;  %v432_v14 = vpack.c.bf16 %v428_v12, %v427_v11  ;;  %592 = vperm.xlu0 %2985, %v582_v13   ;;  %v696_v15 = vsel %vm695_vm1, %v582_v13, 0.0  ;;  %v584_v16 = vld [vmem:[%s3211_s25 + $0x10] sm:$0xff]  ;;  %v583_v17 = vld [vmem:[%s3211_s25 + $0x8] sm:$0xff]  ;;  %v585_v18 = vld [vmem:[%s3211_s25 + $0x18] sm:$0xff]  ;;  %p3031_p0 = scmp.lt.s32.totalorder %s2373_s24, %s3029_s1  ;;  %p3032_p1 = scmp.lt.s32.totalorder %s3030_s2, %s3024_s13 }
  0x20   : > { %2597 = vmatmul.mubr.msk.bf16.vlgmr.msra.gmra.mrb[0].mxu0 %vm448_vm0, %v430_v9  ;;  %v697_v19 = vrot.slane %v696_v15, 4  ;;  %602 = vperm.xlu1 %2986, %v584_v16   ;;  %v710_v20 = vsel %vm695_vm1, %v584_v16, 0.0  ;;  %v703_v21 = vsel %vm695_vm1, %v583_v17, 0.0  ;;  %v717_v22 = vsel %vm695_vm1, %v585_v18, 0.0  ;;  %v586_v23 = vld [vmem:[%s3211_s25 + $0x20] sm:$0xff]  ;;  %v587_v28 = vld [vmem:[%s3211_s25 + $0x28] sm:$0xff]  ;;  %p3026_p12 = pnand %p3025_p11, %p3191_p5 }
  0x21   : > { %2600 = vmatprep.mubr.msk.bf16.mxu0 %vm448_vm0, %v431_v10  ;;  %v711_v24 = vrot.slane %v710_v20, 4  ;;  %v704_v25 = vrot.slane %v703_v21, 4  ;;  %v718_v26 = vrot.slane %v717_v22, 4  ;;  %v724_v27 = vsel %vm695_vm1, %v586_v23, 0.0  ;;  %v588_v29 = vld [vmem:[%s3211_s25 + $0x30] sm:$0xff]  ;;  %v589_v38 = vld [vmem:[%s3211_s25 + $0x38] sm:$0xff]  ;;  %p3033_p2 = por %p3032_p1, %p3031_p0 }
  0x22   : > { %v698_v30 = vadd.f32 %v697_v19, %v696_v15  ;;  %v725_v31 = vrot.slane %v724_v27, 4  ;;  %v731_v32 = vsel %vm695_vm1, %v587_v28, 0.0  ;;  %v738_v33 = vsel %vm695_vm1, %v588_v29, 0.0  ;;  %v753_v15 = vld [vmem:[%s3524_s4 + $0x8] sm:$0xff]  ;;  %s3541_s25 = sand.u32 1, %s3078_s18   ;;  %p3027_p13 = pneg %p3026_p12 }
  0x23   : > { %v712_v34 = vadd.f32 %v711_v24, %v710_v20  ;;  %v705_v35 = vadd.f32 %v704_v25, %v703_v21  ;;  %597 = vperm.xlu0 %2985, %v583_v17   ;;  %v719_v36 = vadd.f32 %v718_v26, %v717_v22  ;;  %v732_v37 = vrot.slane %v731_v32, 4  ;;  %v754_v20 = vld [vmem:[%s3524_s4 + $0x10] sm:$0xff]  ;;  %v755_v21 = vld [vmem:[%s3524_s4 + $0x18] sm:$0xff]  ;;  %s2356_s29 = scalar_lea.sflag [#allocation3], %s3541_s25 }
  0x24   : > { %v699_v39 = vrot.slane %v698_v30, 2  ;;  %607 = vperm.xlu1 %2986, %v585_v18   ;;  %v726_v40 = vadd.f32 %v725_v31, %v724_v27  ;;  %v739_v41 = vrot.slane %v738_v33, 4  ;;  %v745_v42 = vsel %vm695_vm1, %v589_v38, 0.0  ;;  %p3034_p3 = pnand %p3033_p2, %p3027_p13 }
  0x25   : > { %v713_v43 = vrot.slane %v712_v34, 2  ;;  %v706_v44 = vrot.slane %v705_v35, 2  ;;  %v720_v45 = vrot.slane %v719_v36, 2  ;;  %v733_v46 = vadd.f32 %v732_v37, %v731_v32 }
  0x26   : > { %v700_v47 = vadd.f32 %v699_v39, %v698_v30  ;;  %v746_v48 = vrot.slane %v745_v42, 4  ;;  %v727_v51 = vrot.slane %v726_v40, 2  ;;  %v740_v52 = vadd.f32 %v739_v41, %v738_v33 }
  0x27   : > { %v714_v49 = vadd.f32 %v713_v43, %v712_v34  ;;  %v707_v50 = vadd.f32 %v706_v44, %v705_v35  ;;  %612 = vperm.xlu0 %2985, %v586_v23   ;;  %v721_v53 = vadd.f32 %v720_v45, %v719_v36  ;;  %v734_v54 = vrot.slane %v733_v46, 2 }
  0x28   : > { %2601 = vmatmul.mubr.msk.bf16.gmra.mrb[4].mxu0 %vm448_vm0, %v432_v14  ;;  %617 = vperm.xlu1 %2986, %v587_v28   ;;  %v747_v55 = vadd.f32 %v746_v48, %v745_v42  ;;  %v728_v58 = vadd.f32 %v727_v51, %v726_v40  ;;  %v741_v59 = vrot.slane %v740_v52, 2  ;;  %v701_v61 = vrot.slane %v700_v47, 1  ;;  %v752_v14 = vld [vmem:[%s3524_s4] sm:$0xff] }
  0x29   : > { %v708_v56 = vrot.slane %v707_v50, 1  ;;  %v715_v57 = vrot.slane %v714_v49, 1  ;;  %v735_v62 = vadd.f32 %v734_v54, %v733_v46  ;;  %v722_v1 = vrot.slane %v721_v53, 1  ;;  %v2477_v48 = vld [vmem:[%s3523_s3] ss:$0 sm:$0xff] }
  0x2a   : > { %v748_v63 = vrot.slane %v747_v55, 2  ;;  %v742_v2 = vadd.f32 %v741_v59, %v740_v52  ;;  %v702_v3 = vadd.f32 %v701_v61, %v700_v47  ;;  %v729_v4 = vrot.slane %v728_v58, 1 }
  0x2b   : > { %622 = vperm.xlu0 %2985, %v588_v29   ;;  %v709_v60 = vadd.f32 %v708_v56, %v707_v50  ;;  %v716_v0 = vadd.f32 %v715_v57, %v714_v49  ;;  %v723_v6 = vadd.f32 %v722_v1, %v721_v53  ;;  %v736_v7 = vrot.slane %v735_v62, 1 }
  0x2c   : > { %627 = vperm.xlu1 %2986, %v589_v38   ;;  %v749_v5 = vadd.f32 %v748_v63, %v747_v55  ;;  %v730_v8 = vadd.f32 %v729_v4, %v728_v58  ;;  %v743_v9 = vrot.slane %v742_v2, 1  ;;  %v859_v16 = vand.u32 4294901760, %v752_v14 }
  0x2d   : > { %v737_v10 = vadd.f32 %v736_v7, %v735_v62  ;;  %v862_v17 = vand.u32 4294901760, %v753_v15  ;;  %v3089_v23 = vmov 0.0|0.0   ;;  %v865_v25 = vand.u32 4294901760, %v754_v20 }
  0x2e   : > { %v750_v11 = vrot.slane %v749_v5, 1  ;;  %v744_v12 = vadd.f32 %v743_v9, %v742_v2  ;;  %v939_v18 = vsub.f32 %v752_v14, %v859_v16  ;;  %2814 = vmatprep.subr.bf16.mxu1 %v3089_v23  ;;  %2802 = vmatprep.subr.bf16.mxu0 %v3089_v23  ;;  %v868_v26 = vand.u32 4294901760, %v755_v21 }
  0x2f   : > { %764 = vperm.xlu0 %2985, %v709_v60   ;;  %v946_v19 = vsub.f32 %v753_v15, %v862_v17  ;;  %v3245_v22 = vpack.c.bf16 %v862_v17, %v859_v16  ;;  %v3091_v27 = vmov 0.0   ;;  %v953_v28 = vsub.f32 %v754_v20, %v865_v25 }
  0x30   : > { %769 = vperm.xlu1 %2986, %v716_v0   ;;  %v751_v13 = vadd.f32 %v750_v11, %v749_v5  ;;  %2634 = vmatprep.mubr.msk.f32.mxu1 %vm3090_vm2, %v3091_v27  ;;  %v960_v29 = vsub.f32 %v755_v21, %v868_v26  ;;  %v940_v31 = vand.u32 4294901760, %v939_v18  ;;  %v3257_v33 = vpack.c.bf16 %v868_v26, %v865_v25 }
  0x31   : > { %v2815_v24 = vpack.c.bf16 %v946_v19, %v939_v18  ;;  %2804 = vmatpush3.bf16.msra.mxu0 %v3245_v22  ;;  %2612 = vmatprep.mubr.msk.f32.mxu0 %vm3090_vm2, %v3091_v27  ;;  %v947_v32 = vand.u32 4294901760, %v946_v19  ;;  %v954_v38 = vand.u32 4294901760, %v953_v28 }
  0x32   : > { %2805 = vmatprep.subr.bf16.mxu0 %v3089_v23  ;;  %v2818_v30 = vpack.c.bf16 %v960_v29, %v953_v28  ;;  %v941_v34 = vsub.f32 %v939_v18, %v940_v31  ;;  %v961_v39 = vand.u32 4294901760, %v960_v29 }
  0x33   : > { %759 = vperm.xlu0 %2985, %v702_v3   ;;  %2816 = vmatpush3.bf16.msra.mxu1 %v2815_v24  ;;  %v948_v35 = vsub.f32 %v946_v19, %v947_v32  ;;  %v955_v41 = vsub.f32 %v953_v28, %v954_v38  ;;  %v3263_v42 = vpack.c.bf16 %v947_v32, %v940_v31 }
  0x34   : > { %774 = vperm.xlu1 %2986, %v723_v6   ;;  %2817 = vmatprep.subr.bf16.mxu1 %v3089_v23  ;;  %v942_v36 = vand.u32 4294901760, %v941_v34  ;;  %v962_v43 = vsub.f32 %v960_v29, %v961_v39  ;;  %v3265_v46 = vpack.c.bf16 %v961_v39, %v954_v38 }
  0x35   : > { %2807 = vmatpush3.bf16.msra.mxu0 %v3257_v33  ;;  %v949_v37 = vand.u32 4294901760, %v948_v35  ;;  %v956_v44 = vand.u32 4294901760, %v955_v41 }
  0x36   : > { %2808 = vmatprep.subr.bf16.mxu0 %v3089_v23  ;;  %v963_v45 = vand.u32 4294901760, %v962_v43 }
  0x37   : > { %779 = vperm.xlu0 %2985, %v730_v8   ;;  %2819 = vmatpush3.bf16.msra.mxu1 %v2818_v30  ;;  %v3261_v40 = vpack.c.bf16 %v949_v37, %v942_v36 }
  0x38   : > { %784 = vperm.xlu1 %2986, %v737_v10   ;;  %2820 = vmatprep.subr.bf16.mxu1 %v3089_v23  ;;  %v3267_v47 = vpack.c.bf16 %v963_v45, %v956_v44 }
  0x3b   : > { %789 = vperm.xlu0 %2985, %v744_v12  }
  0x3c   : > { %794 = vperm.xlu1 %2986, %v751_v13  }
  0x9e   : > { %v593_v17 = vpop.permute.xlu0 %592 }
  0x9f   : > { %v603_v18 = vpop.permute.xlu1 %602 }
  0xa2   : > { %v598_v28 = vpop.permute.xlu0 %597 }
  0xa3   : > { %v608_v32 = vpop.permute.xlu1 %607 }
  0xa6   : > { %v613_v45 = vpop.permute.xlu0 %612 }
  0xf3   : > { %v2598_v49 = vpop.f32.mrb[0].mxu0 }
  0xf4   : > { %v504_v50 = vadd.f32 %v2598_v49, %v2477_v48  ;;  %v495_v51 = vpop.f32.mrb[1].mxu0 }
  0xf5   : > { %v496_v52 = vadd.f32 %v2477_v48, %v495_v51  ;;  %v2599_v53 = vpop.f32.mrb[2].mxu0 }
  0xf6   : > { %v2485_v54 = vmul.f32 -1.442695, %v504_v50  ;;  %v507_v55 = vadd.f32 %v2599_v53, %v2477_v48  ;;  %v498_v56 = vpop.f32.mrb[3].mxu0 }
  0xf7   : > { %v2483_v57 = vmul.f32 -1.442695, %v496_v52  ;;  %v499_v58 = vadd.f32 %v2477_v48, %v498_v56  ;;  %v618_v56 = vpop.permute.xlu1 %617 }
  0xf8   : > { %2988 = vpow2.f32 %v2485_v54  ;;  %v2486_v59 = vmul.f32 -1.442695, %v507_v55 }
  0xf9   : > { %2990 = vpow2.f32 %v2483_v57  ;;  %v2484_v60 = vmul.f32 -1.442695, %v499_v58 }
  0xfa   : > { %2992 = vpow2.f32 %v2486_v59 }
  0xfb   : > { %2994 = vpow2.f32 %v2484_v60  ;;  %v2602_v61 = vpop.f32.mrb[4].mxu0 }
  0xfc   : > { %v3272_v62 = vadd.f32 %v2602_v61, %v2477_v48  ;;  %v511_v63 = vpop.f32.mrb[5].mxu0 }
  0xfd   : > { %v3274_v0 = vadd.f32 %v2477_v48, %v511_v63  ;;  %v2603_v1 = vpop.f32.mrb[6].mxu0 }
  0xfe   : > { %v2489_v2 = vmul.f32 -1.442695, %v3272_v62  ;;  %v3277_v3 = vadd.f32 %v2603_v1, %v2477_v48  ;;  %v514_v4 = vpop.f32.mrb[7].mxu0 }
  0xff   : > { %v2487_v5 = vmul.f32 -1.442695, %v3274_v0  ;;  %v3280_v6 = vadd.f32 %v2477_v48, %v514_v4 }
 0x100   : > { %2996 = vpow2.f32 %v2489_v2  ;;  %v2490_v7 = vmul.f32 -1.442695, %v3277_v3 }
 0x101   : > { %2998 = vpow2.f32 %v2487_v5  ;;  %v2488_v8 = vmul.f32 -1.442695, %v3280_v6 }
 0x102   : > { %v2989_v9 = vpop.eup %2988  ;;  %3000 = vpow2.f32 %v2490_v7 }
 0x103   : > { %v2991_v10 = vpop.eup %2990  ;;  %v552_v11 = vadd.f32 1.0, %v2989_v9  ;;  %3002 = vpow2.f32 %v2488_v8  ;;  %v623_v8 = vpop.permute.xlu0 %622 }
 0x104   : > { %v2993_v12 = vpop.eup %2992  ;;  %v550_v13 = vadd.f32 1.0, %v2991_v10 }
 0x105   : > { %v2995_v14 = vpop.eup %2994  ;;  %3004 = vrcp.f32 %v552_v11  ;;  %v553_v15 = vadd.f32 1.0, %v2993_v12 }
 0x106   : > { %3006 = vrcp.f32 %v550_v13  ;;  %v551_v16 = vadd.f32 1.0, %v2995_v14 }
 0x107   : > { %3008 = vrcp.f32 %v553_v15 }
 0x108   : > { %3010 = vrcp.f32 %v551_v16 }
 0x10a   : > { %v2997_v19 = vpop.eup %2996 }
 0x10b   : > { %v2999_v20 = vpop.eup %2998  ;;  %v556_v21 = vadd.f32 1.0, %v2997_v19 }
 0x10c   : > { %v3001_v24 = vpop.eup %3000  ;;  %v554_v25 = vadd.f32 1.0, %v2999_v20 }
 0x10d   : > { %v3003_v26 = vpop.eup %3002  ;;  %3012 = vrcp.f32 %v556_v21  ;;  %v557_v29 = vadd.f32 1.0, %v3001_v24 }
 0x10e   : > { %3014 = vrcp.f32 %v554_v25  ;;  %v555_v30 = vadd.f32 1.0, %v3003_v26 }
 0x10f   : > { %v3005_v31 = vpop.eup %3004  ;;  %3016 = vrcp.f32 %v557_v29 }
 0x110   : > { %v3007_v34 = vpop.eup %3006  ;;  %v576_v35 = vmul.f32 %v3005_v31, %v504_v50  ;;  %3018 = vrcp.f32 %v555_v30 }
 0x111   : > { %v3009_v36 = vpop.eup %3008  ;;  %v574_v37 = vmul.f32 %v3007_v34, %v496_v52 }
 0x112   : > { %v3011_v38 = vpop.eup %3010  ;;  %v632_v39 = vmul.f32 %v603_v18, %v576_v35  ;;  %v577_v41 = vmul.f32 %v3009_v36, %v507_v55  ;;  %v628_v18 = vpop.permute.xlu1 %627 }
 0x113   : > { %v630_v43 = vmul.f32 %v593_v17, %v574_v37  ;;  %v575_v44 = vmul.f32 %v3011_v38, %v499_v58 }
 0x114   : > { %v653_v48 = vsel %vm638_vm3, %v632_v39, 0.0  ;;  %v633_v49 = vmul.f32 %v608_v32, %v577_v41 }
 0x115   : > { %v639_v51 = vsel %vm638_vm3, %v630_v43, 0.0  ;;  %v654_v53 = vrot.slane %v653_v48, 4  ;;  %v631_v54 = vmul.f32 %v598_v28, %v575_v44 }
 0x116   : > { %v640_v57 = vrot.slane %v639_v51, 4  ;;  %v660_v50 = vsel %vm638_vm3, %v633_v49, 0.0 }
 0x117   : > { %v3013_v59 = vpop.eup %3012  ;;  %v655_v60 = vadd.f32 %v654_v53, %v653_v48  ;;  %v646_v52 = vsel %vm638_vm3, %v631_v54, 0.0  ;;  %v661_v61 = vrot.slane %v660_v50, 4 }
 0x118   : > { %v3015_v55 = vpop.eup %3014  ;;  %v641_v63 = vadd.f32 %v640_v57, %v639_v51  ;;  %v647_v58 = vrot.slane %v646_v52, 4  ;;  %v580_v1 = vmul.f32 %v3013_v59, %v3272_v62 }
 0x119   : > { %v3017_v2 = vpop.eup %3016  ;;  %v656_v4 = vrot.slane %v655_v60, 2  ;;  %v662_v5 = vadd.f32 %v661_v61, %v660_v50  ;;  %v578_v7 = vmul.f32 %v3015_v55, %v3274_v0 }
 0x11a   : > { %v3019_v9 = vpop.eup %3018  ;;  %v642_v10 = vrot.slane %v641_v63, 2  ;;  %v648_v11 = vadd.f32 %v647_v58, %v646_v52  ;;  %v636_v12 = vmul.f32 %v623_v8, %v580_v1  ;;  %v581_v13 = vmul.f32 %v3017_v2, %v3277_v3 }
 0x11b   : > { %v657_v14 = vadd.f32 %v656_v4, %v655_v60  ;;  %v663_v15 = vrot.slane %v662_v5, 2  ;;  %v634_v16 = vmul.f32 %v613_v45, %v578_v7  ;;  %v579_v17 = vmul.f32 %v3019_v9, %v3280_v6 }
 0x11c   : > { %v643_v19 = vadd.f32 %v642_v10, %v641_v63  ;;  %v649_v62 = vrot.slane %v648_v11, 2  ;;  %v681_v20 = vsel %vm638_vm3, %v636_v12, 0.0  ;;  %v637_v21 = vmul.f32 %v628_v18, %v581_v13 }
 0x11d   : > { %v664_v24 = vadd.f32 %v663_v15, %v662_v5  ;;  %v667_v0 = vsel %vm638_vm3, %v634_v16, 0.0  ;;  %v635_v25 = vmul.f32 %v618_v56, %v579_v17  ;;  %v682_v30 = vrot.slane %v681_v20, 4 }
 0x11e   : > { %v644_v26 = vrot.slane %v643_v19, 1  ;;  %v650_v28 = vadd.f32 %v649_v62, %v648_v11  ;;  %v668_v29 = vrot.slane %v667_v0, 4  ;;  %v658_v3 = vrot.slane %v657_v14, 1  ;;  %v1347_v62 = vld [vmem:[%s3526_s6 + $0x18] sm:$0xff] }
 0x11f   : > { %v674_v31 = vsel %vm638_vm3, %v635_v25, 0.0  ;;  %v688_v32 = vsel %vm638_vm3, %v637_v21, 0.0  ;;  %v665_v34 = vrot.slane %v664_v24, 1  ;;  %v683_v37 = vadd.f32 %v682_v30, %v681_v20 }
 0x120   : > { %v651_v6 = vrot.slane %v650_v28, 1  ;;  %v669_v35 = vadd.f32 %v668_v29, %v667_v0  ;;  %v675_v36 = vrot.slane %v674_v31, 4  ;;  %v689_v38 = vrot.slane %v688_v32, 4 }
 0x121   : > { %v645_v39 = vadd.f32 %v644_v26, %v643_v19  ;;  %v659_v45 = vadd.f32 %v658_v3, %v657_v14  ;;  %v684_v48 = vrot.slane %v683_v37, 2  ;;  %v666_v51 = vadd.f32 %v665_v34, %v664_v24  ;;  %v1346_v19 = vld [vmem:[%s3526_s6 + $0x10] sm:$0xff] }
 0x122   : > { %v652_v41 = vadd.f32 %v651_v6, %v650_v28  ;;  %v670_v43 = vrot.slane %v669_v35, 2  ;;  %v676_v44 = vadd.f32 %v675_v36, %v674_v31  ;;  %v690_v49 = vadd.f32 %v689_v38, %v688_v32 }
 0x123   : > { %v685_v57 = vadd.f32 %v684_v48, %v683_v37  ;;  %v1365_v20 = vand.u32 4294901760, %v1346_v19  ;;  %v1368_v21 = vand.u32 4294901760, %v1347_v62  ;;  %v765_v48 = vpop.permute.xlu0 %764 }
 0x124   : > { %v671_v53 = vadd.f32 %v670_v43, %v669_v35  ;;  %v677_v54 = vrot.slane %v676_v44, 2  ;;  %v820_v56 = vsel %vm819_vm4, %v652_v41, %v645_v39  ;;  %v691_v50 = vrot.slane %v690_v49, 2 }
 0x125   : > { %v822_v59 = vsel %vm821_vm5, %v659_v45, %v820_v56  ;;  %v686_v55 = vrot.slane %v685_v57, 1  ;;  %v3354_v25 = vpack.c.bf16 %v1368_v21, %v1365_v20  ;;  %v3356_v26 = vsub.f32 %v1346_v19, %v1365_v20 }
 0x126   : > { %v672_v60 = vrot.slane %v671_v53, 1  ;;  %v678_v52 = vadd.f32 %v677_v54, %v676_v44  ;;  %v824_v61 = vsel %vm823_vm6, %v666_v51, %v822_v59  ;;  %v692_v63 = vadd.f32 %v691_v50, %v690_v49  ;;  %v2491_v49 = vld [vmem:[%s3525_s5] ss:$0 sm:$0xff]  ;;  %v770_v51 = vpop.permute.xlu1 %769 }
 0x127   : > { %v687_v7 = vadd.f32 %v686_v55, %v685_v57  ;;  %v3358_v28 = vsub.f32 %v1347_v62, %v1368_v21  ;;  %v1454_v31 = vand.u32 4294901760, %v3356_v26  ;;  %v760_v54 = vpop.permute.xlu0 %759  ;;  %v805_v56 = vmul.f32 %v2491_v49, %v770_v51 }
 0x128   : > { %v673_v58 = vadd.f32 %v672_v60, %v671_v53  ;;  %v679_v1 = vrot.slane %v678_v52, 1  ;;  %v693_v2 = vrot.slane %v692_v63, 1  ;;  %v804_v53 = vmul.f32 %v2491_v49, %v765_v48 }
 0x129   : > { %v1461_v32 = vand.u32 4294901760, %v3358_v28  ;;  %v1455_v34 = vsub.f32 %v3356_v26, %v1454_v31  ;;  %v2854_v43 = vpack.c.bf16 %v3358_v28, %v3356_v26  ;;  %v803_v59 = vmul.f32 %v2491_v49, %v760_v54 }
 0x12a   : > { %v680_v4 = vadd.f32 %v679_v1, %v678_v52  ;;  %v826_v5 = vsel %vm825_vm7, %v673_v58, %v824_v61  ;;  %v694_v8 = vadd.f32 %v693_v2, %v692_v63  ;;  %v775_v57 = vpop.permute.xlu1 %774  ;;  %v841_v50 = vrot.slane %v804_v53, 7 }
 0x12b   : > { %v1462_v35 = vsub.f32 %v3358_v28, %v1461_v32  ;;  %v1456_v37 = vand.u32 4294901760, %v1455_v34  ;;  %v3374_v45 = vpack.c.bf16 %v1461_v32, %v1454_v31  ;;  %v806_v60 = vmul.f32 %v2491_v49, %v775_v57  ;;  %v780_v52 = vpop.permute.xlu0 %779  ;;  %v1850_v28 = vld [vmem:[%s3528_s8] sm:$0xff]  ;;  %v1853_v31 = vld [vmem:[%s3528_s8 + $0x18] sm:$0xff] }
 0x12c   : > { %v828_v9 = vsel %vm827_vm8, %v680_v4, %v826_v5  ;;  %v843_v61 = vrot.slane %v805_v56, 6  ;;  %v842_v55 = vsel %vm819_vm4, %v841_v50, %v803_v59  ;;  %v807_v63 = vmul.f32 %v2491_v49, %v780_v52 }
 0x12d   : > { %v830_v10 = vsel %vm829_vm9, %v687_v7, %v828_v9  ;;  %v1463_v38 = vand.u32 4294901760, %v1462_v35  ;;  %v845_v1 = vrot.slane %v806_v60, 5  ;;  %v1874_v35 = vand.u32 4294901760, %v1853_v31 }
 0x12e   : > { %v832_v11 = vsel %vm831_vm10, %v694_v8, %v830_v10  ;;  %v785_v58 = vpop.permute.xlu1 %784  ;;  %v844_v2 = vsel %vm821_vm5, %v843_v61, %v842_v55  ;;  %v847_v7 = vrot.slane %v807_v63, 4  ;;  %v2492_v63 = vld [vmem:[%s3527_s7] ss:$0 sm:$0xff] }
 0x12f   : > { %v856_v12 = vsel %vm638_vm3, %v832_v11, 0  ;;  %v2848_v39 = vpack.c.bf16 %v1463_v38, %v1456_v37  ;;  %v808_v4 = vmul.f32 %v2491_v49, %v785_v58  ;;  %v790_v5 = vpop.permute.xlu0 %789  ;;  %v846_v8 = vsel %vm823_vm6, %v845_v1, %v844_v2 }
 0x130   : > { %v927_v13 = vand.u32 4294901760, %v856_v12  ;;  %v809_v9 = vmul.f32 %v2491_v49, %v790_v5 }
 0x131   : > { %v849_v11 = vrot.slane %v808_v4, 3 }
 0x132   : > { %v928_v14 = vsub.f32 %v856_v12, %v927_v13  ;;  %v795_v10 = vpop.permute.xlu1 %794  ;;  %v848_v12 = vsel %vm825_vm7, %v847_v7, %v846_v8 }
 0x134   : > { %v929_v15 = vand.u32 4294901760, %v928_v14  ;;  %2635 = vmatmul.mubr.f32.vlgmr.msra.gmra.mrb[0].mxu1 %v928_v14 }
 0x135   : > { %2822 = vmatpush3.bf16.msra.mxu1 %v3245_v22  ;;  %2645 = vmatprep.mubr.msk.f32.mxu1 %vm3090_vm2, %v3091_v27 }
 0x136   : > { %v930_v16 = vsub.f32 %v928_v14, %v929_v15  ;;  %2823 = vmatprep.subr.bf16.mxu1 %v3089_v23 }
 0x138   : > { %v931_v17 = vand.u32 4294901760, %v930_v16 }
 0x139   : > { %2825 = vmatpush3.bf16.msra.mxu1 %v3257_v33 }
 0x13a   : > { %2613 = vmatmul.mubr.f32.vlgmr.msra.gmra.mrb[8].mxu0 %v931_v17  ;;  %2826 = vmatprep.subr.bf16.mxu1 %v3089_v23  ;;  %v850_v17 = vsel %vm827_vm8, %v849_v11, %v848_v12 }
 0x13b   : > { %2810 = vmatpush3.bf16.msra.mxu0 %v3261_v40  ;;  %2623 = vmatprep.mubr.msk.f32.mxu0 %vm3090_vm2, %v3091_v27  ;;  %v1344_v40 = vld [vmem:[%s3526_s6] sm:$0xff] }
 0x13c   : > { %2646 = vmatmul.mubr.f32.vlgmr.msra.gmra.mrb[0].mxu1 %v929_v15  ;;  %2811 = vmatprep.subr.bf16.mxu0 %v3089_v23  ;;  %v851_v15 = vrot.slane %v809_v9, 2 }
 0x13d   : > { %2828 = vmatpush3.bf16.msra.mxu1 %v3263_v42  ;;  %2656 = vmatprep.mubr.msk.f32.mxu1 %vm3090_vm2, %v3091_v27  ;;  %v1359_v42 = vand.u32 4294901760, %v1344_v40 }
 0x13e   : > { %2829 = vmatprep.subr.bf16.mxu1 %v3089_v23 }
 0x13f   : > { %2813 = vmatpush3.bf16.msra.mxu0 %v3267_v47  ;;  %v3340_v18 = vsub.f32 %v1344_v40, %v1359_v42 }
 0x140   : > { %2838 = vmatprep.subr.bf16.mxu0 %v3089_v23 }
 0x141   : > { %2831 = vmatpush3.bf16.msra.mxu1 %v3265_v46  ;;  %v1440_v24 = vand.u32 4294901760, %v3340_v18 }
 0x142   : > { %2624 = vmatmul.mubr.f32.vlgmr.msra.gmra.mrb[8].mxu0 %v927_v13  ;;  %2832 = vmatprep.subr.bf16.mxu1 %v3089_v23 }
 0x143   : > { %2678 = vmatprep.mubr.msk.f32.mxu0 %vm3090_vm2, %v3091_v27  ;;  %v1441_v29 = vsub.f32 %v3340_v18, %v1440_v24 }
 0x144   : > { %2657 = vmatmul.mubr.f32.vlgmr.msra.gmra.mrb[0].mxu1 %v927_v13 }
 0x145   : > { %2834 = vmatpush3.bf16.msra.mxu1 %v3245_v22  ;;  %2667 = vmatprep.mubr.msk.f32.mxu1 %vm3090_vm2, %v3091_v27  ;;  %v1345_v22 = vld [vmem:[%s3526_s6 + $0x8] sm:$0xff]  ;;  %v1442_v3 = vand.u32 4294901760, %v1441_v29 }
 0x146   : > { %2835 = vmatprep.subr.bf16.mxu1 %v3089_v23  ;;  %v1362_v46 = vand.u32 4294901760, %v1345_v22  ;;  %v1851_v29 = vld [vmem:[%s3528_s8 + $0x8] sm:$0xff] }
 0x148   : > { %v3338_v47 = vpack.c.bf16 %v1362_v46, %v1359_v42 }
 0x149   : > { %2837 = vmatpush3.bf16.msra.mxu1 %v3257_v33  ;;  %v3342_v33 = vsub.f32 %v1345_v22, %v1362_v46  ;;  %v852_v22 = vsel %vm829_vm9, %v851_v15, %v850_v17 }
 0x14a   : > { %2874 = vmatprep.subr.bf16.mxu1 %v3089_v23  ;;  %2840 = vmatpush3.bf16.msra.mxu0 %v3338_v47 }
 0x14b   : > { %v1447_v0 = vand.u32 4294901760, %v3342_v33  ;;  %2841 = vmatprep.subr.bf16.mxu0 %v3089_v23  ;;  %v2851_v41 = vpack.c.bf16 %v3342_v33, %v3340_v18 }
 0x14c   : > { %2668 = vmatmul.mubr.f32.vlgmr.msra.gmra.mrb[0].mxu1 %v927_v13  ;;  %v810_v13 = vmul.f32 %v2491_v49, %v795_v10 }
 0x14d   : > { %2744 = vmatprep.mubr.msk.f32.mxu1 %vm3090_vm2, %v3091_v27  ;;  %v1448_v30 = vsub.f32 %v3342_v33, %v1447_v0  ;;  %v3372_v44 = vpack.c.bf16 %v1447_v0, %v1440_v24 }
 0x14e   : > { %2843 = vmatpush3.bf16.msra.mxu0 %v3354_v25  ;;  %v853_v40 = vrot.slane %v810_v13, 1 }
 0x14f   : > { %2844 = vmatprep.subr.bf16.mxu0 %v3089_v23  ;;  %v1449_v6 = vand.u32 4294901760, %v1448_v30  ;;  %v1865_v30 = vand.u32 4294901760, %v1850_v28 }
 0x150   : > { %v854_v42 = vsel %vm831_vm10, %v853_v40, %v852_v22 }
 0x151   : > { %v2845_v36 = vpack.c.bf16 %v1449_v6, %v1442_v3  ;;  %v1868_v3 = vand.u32 4294901760, %v1851_v29  ;;  %v1945_v32 = vsub.f32 %v1850_v28, %v1865_v30 }
 0x153   : > { %v1952_v6 = vsub.f32 %v1851_v29, %v1868_v3  ;;  %v1946_v37 = vand.u32 4294901760, %v1945_v32 }
 0x155   : > { %v1953_v38 = vand.u32 4294901760, %v1952_v6  ;;  %v2887_v60 = vpack.c.bf16 %v1952_v6, %v1945_v32 }
 0x157   : > { %v2899_v61 = vpack.c.bf16 %v1953_v38, %v1946_v37 }
 0x215   : > { %v1024_v14 = vpop.f32.mrb[8].mxu0 }
 0x216   : > { %v2625_v16 = vpop.f32.mrb[9].mxu0  ;;  %v2910_v46 = vadd.f32 %v1024_v14, %v854_v42 }
 0x21f   : > { %v1339_v18 = vpop.f32.mrb[0].mxu1 }
 0x220   : > { %v2911_v33 = vadd.f32 %v2910_v46, %v1339_v18  ;;  %v2669_v19 = vpop.f32.mrb[1].mxu1 }
 0x222   : > { %v1356_v62 = vsel %vm638_vm3, %v2911_v33, 0  ;;  %1343 = vst.msk [vmem:[%s403_s12] sm:$0xff] %vm638_vm3, %v2911_v33 }
 0x223   : > { %v1427_v20 = vand.u32 4294901760, %v1356_v62 }
 0x225   : > { %v1428_v21 = vsub.f32 %v1356_v62, %v1427_v20 }
 0x227   : > { %v1429_v24 = vand.u32 4294901760, %v1428_v21 }
 0x229   : > { %v1430_v0 = vsub.f32 %v1428_v21, %v1429_v24 }
 0x22b   : > { %v1431_v26 = vand.u32 4294901760, %v1430_v0 }
 0x22d   : > { %2679 = vmatmul.mubr.f32.vlgmr.msra.gmra.mrb[10].mxu0 %v1431_v26 }
 0x22e   : > { %2846 = vmatpush3.bf16.msra.mxu0 %v2845_v36  ;;  %2689 = vmatprep.mubr.msk.f32.mxu0 %vm3090_vm2, %v3091_v27 }
 0x22f   : > { %2847 = vmatprep.subr.bf16.mxu0 %v3089_v23 }
 0x232   : > { %2849 = vmatpush3.bf16.msra.mxu0 %v2848_v39 }
 0x233   : > { %2850 = vmatprep.subr.bf16.mxu0 %v3089_v23 }
 0x235   : > { %2690 = vmatmul.mubr.f32.vlgmr.msra.gmra.mrb[10].mxu0 %v1427_v20 }
 0x236   : > { %2852 = vmatpush3.bf16.msra.mxu0 %v2851_v41  ;;  %2700 = vmatprep.mubr.msk.f32.mxu0 %vm3090_vm2, %v3091_v27  ;;  %v1966_v41 = vsub.f32 %v1853_v31, %v1874_v35 }
 0x237   : > { %2853 = vmatprep.subr.bf16.mxu0 %v3089_v23 }
 0x238   : > { %v1967_v51 = vand.u32 4294901760, %v1966_v41 }
 0x23a   : > { %2855 = vmatpush3.bf16.msra.mxu0 %v2854_v43  ;;  %v1947_v43 = vsub.f32 %v1945_v32, %v1946_v37  ;;  %v1968_v56 = vsub.f32 %v1966_v41, %v1967_v51 }
 0x23b   : > { %2856 = vmatprep.subr.bf16.mxu0 %v3089_v23 }
 0x23c   : > { %v1969_v50 = vand.u32 4294901760, %v1968_v56 }
 0x23d   : > { %2701 = vmatmul.mubr.f32.vlgmr.msra.gmra.mrb[10].mxu0 %v1428_v21 }
 0x23e   : > { %2858 = vmatpush3.bf16.msra.mxu0 %v3338_v47  ;;  %2711 = vmatprep.mubr.msk.f32.mxu0 %vm3090_vm2, %v3091_v27 }
 0x23f   : > { %2859 = vmatprep.subr.bf16.mxu0 %v3089_v23 }
 0x242   : > { %2861 = vmatpush3.bf16.msra.mxu0 %v3354_v25 }
 0x243   : > { %2862 = vmatprep.subr.bf16.mxu0 %v3089_v23 }
 0x245   : > { %2712 = vmatmul.mubr.f32.vlgmr.msra.gmra.mrb[10].mxu0 %v1429_v24 }
 0x246   : > { %2864 = vmatpush3.bf16.msra.mxu0 %v3372_v44  ;;  %2722 = vmatprep.mubr.msk.f32.mxu0 %vm3090_vm2, %v3091_v27  ;;  %v1954_v44 = vsub.f32 %v1952_v6, %v1953_v38 }
 0x247   : > { %2865 = vmatprep.subr.bf16.mxu0 %v3089_v23 }
 0x248   : > { %v1955_v48 = vand.u32 4294901760, %v1954_v44 }
 0x24a   : > { %2867 = vmatpush3.bf16.msra.mxu0 %v3374_v45  ;;  %v1948_v45 = vand.u32 4294901760, %v1947_v43 }
 0x24b   : > { %2868 = vmatprep.subr.bf16.mxu0 %v3089_v23 }
 0x24c   : > { %v2881_v53 = vpack.c.bf16 %v1955_v48, %v1948_v45 }
 0x24d   : > { %2723 = vmatmul.mubr.f32.vlgmr.msra.gmra.mrb[10].mxu0 %v1427_v20 }
 0x24e   : > { %2870 = vmatpush3.bf16.msra.mxu0 %v3338_v47  ;;  %2733 = vmatprep.mubr.msk.f32.mxu0 %vm3090_vm2, %v3091_v27  ;;  %v1852_v47 = vld [vmem:[%s3528_s8 + $0x10] sm:$0xff] }
 0x24f   : > { %2871 = vmatprep.subr.bf16.mxu0 %v3089_v23  ;;  %v1871_v34 = vand.u32 4294901760, %v1852_v47 }
 0x251   : > { %v1959_v36 = vsub.f32 %v1852_v47, %v1871_v34  ;;  %v3437_v39 = vpack.c.bf16 %v1874_v35, %v1871_v34 }
 0x252   : > { %2873 = vmatpush3.bf16.msra.mxu0 %v3354_v25  ;;  %v3433_v25 = vpack.c.bf16 %v1868_v3, %v1865_v30 }
 0x253   : > { %v1960_v49 = vand.u32 4294901760, %v1959_v36  ;;  %v2890_v52 = vpack.c.bf16 %v1966_v41, %v1959_v36 }
 0x254   : > { %2876 = vmatpush3.bf16.msra.mxu1 %v3433_v25 }
 0x255   : > { %2734 = vmatmul.mubr.f32.vlgmr.msra.gmra.mrb[10].mxu0 %v1427_v20  ;;  %2877 = vmatprep.subr.bf16.mxu1 %v3089_v23  ;;  %v1961_v54 = vsub.f32 %v1959_v36, %v1960_v49  ;;  %v2902_v55 = vpack.c.bf16 %v1967_v51, %v1960_v49 }
 0x257   : > { %v1962_v57 = vand.u32 4294901760, %v1961_v54 }
 0x258   : > { %2879 = vmatpush3.bf16.msra.mxu1 %v3437_v39 }
 0x259   : > { %2880 = vmatprep.subr.bf16.mxu1 %v3089_v23  ;;  %v2884_v59 = vpack.c.bf16 %v1969_v50, %v1962_v57 }
 0x328   : > { %v1839_v58 = vpop.f32.mrb[10].mxu0 }
 0x329   : > { %v2912_v1 = vadd.f32 %v2492_v63, %v1839_v58  ;;  %v2735_v2 = vpop.f32.mrb[11].mxu0 }
 0x32b   : > { %v2493_v4 = vmul.f32 -1.442695, %v2912_v1 }
 0x32d   : > { %3020 = vpow2.f32 %v2493_v4 }
 0x337   : > { %v3021_v5 = vpop.eup %3020 }
 0x338   : > { %v1846_v7 = vadd.f32 1.0, %v3021_v5 }
 0x33a   : > { %3022 = vrcp.f32 %v1846_v7 }
 0x344   : > { %v3023_v8 = vpop.eup %3022 }
 0x345   : > { %v1849_v9 = vmul.f32 %v3023_v8, %v2912_v1 }
 0x347   : > { %v1862_v10 = vsel %vm638_vm3, %v1849_v9, 0 }
 0x348   : > { %v1933_v11 = vand.u32 4294901760, %v1862_v10 }
 0x34a   : > { %v1934_v12 = vsub.f32 %v1862_v10, %v1933_v11 }
 0x34c   : > { %v1935_v13 = vand.u32 4294901760, %v1934_v12 }
 0x34e   : > { %v1936_v14 = vsub.f32 %v1934_v12, %v1935_v13 }
 0x350   : > { %v1937_v15 = vand.u32 4294901760, %v1936_v14 }
 0x352   : > { %2745 = vmatmul.mubr.f32.vlgmr.msra.gmra.mrb[2].mxu1 %v1937_v15 }
 0x353   : > { %2882 = vmatpush3.bf16.msra.mxu1 %v2881_v53  ;;  %2755 = vmatprep.mubr.msk.f32.mxu1 %vm3090_vm2, %v3091_v27 }
 0x354   : > { %2883 = vmatprep.subr.bf16.mxu1 %v3089_v23 }
 0x357   : > { %2885 = vmatpush3.bf16.msra.mxu1 %v2884_v59 }
 0x358   : > { %2886 = vmatprep.subr.bf16.mxu1 %v3089_v23 }
 0x35a   : > { %2756 = vmatmul.mubr.f32.vlgmr.msra.gmra.mrb[2].mxu1 %v1933_v11 }
 0x35b   : > { %2888 = vmatpush3.bf16.msra.mxu1 %v2887_v60  ;;  %2766 = vmatprep.mubr.msk.f32.mxu1 %vm3090_vm2, %v3091_v27 }
 0x35c   : > { %2889 = vmatprep.subr.bf16.mxu1 %v3089_v23 }
 0x35f   : > { %2891 = vmatpush3.bf16.msra.mxu1 %v2890_v52 }
 0x360   : > { %2892 = vmatprep.subr.bf16.mxu1 %v3089_v23 }
 0x362   : > { %2767 = vmatmul.mubr.f32.vlgmr.msra.gmra.mrb[2].mxu1 %v1934_v12 }
 0x363   : > { %2894 = vmatpush3.bf16.msra.mxu1 %v3433_v25  ;;  %2777 = vmatprep.mubr.msk.f32.mxu1 %vm3090_vm2, %v3091_v27 }
 0x364   : > { %2895 = vmatprep.subr.bf16.mxu1 %v3089_v23 }
 0x367   : > { %2897 = vmatpush3.bf16.msra.mxu1 %v3437_v39 }
 0x368   : > { %2898 = vmatprep.subr.bf16.mxu1 %v3089_v23 }
 0x36a   : > { %2778 = vmatmul.mubr.f32.vlgmr.msra.gmra.mrb[2].mxu1 %v1935_v13 }
 0x36b   : > { %2900 = vmatpush3.bf16.msra.mxu1 %v2899_v61  ;;  %2788 = vmatprep.mubr.msk.f32.mxu1 %vm3090_vm2, %v3091_v27 }
 0x36c   : > { %2901 = vmatprep.subr.bf16.mxu1 %v3089_v23 }
 0x36f   : > { %2903 = vmatpush3.bf16.msra.mxu1 %v2902_v55 }
 0x370   : > { %2904 = vmatprep.subr.bf16.mxu1 %v3089_v23 }
 0x372   : > { %2789 = vmatmul.mubr.f32.vlgmr.msra.gmra.mrb[2].mxu1 %v1933_v11 }
 0x373   : > { %2906 = vmatpush3.bf16.msra.mxu1 %v3433_v25  ;;  %2799 = vmatprep.mubr.msk.f32.mxu1 %vm3090_vm2, %v3091_v27 }
 0x374   : > { %2907 = vmatprep.subr.bf16.mxu1 %v3089_v23 }
 0x377   : > { %2909 = vmatpush3.bf16.msra.mxu1 %v3437_v39 }
 0x37a   : > { %2800 = vmatmul.mubr.f32.vlgmr.msra.gmra.mrb[2].mxu1 %v1933_v11 }
 0x37b   : > { %3037 = shalt.err (!%p3034_p3)
}
 0x37c   : > { %s3038_s30 = scalar_lea.hbm %s3472_s22, 128  ;;  %s3042_s0 = scalar_lea.hbm %s3531_s11, 256 }
 0x37d   : > { %p3039_p4 = scmp.ne.s32.totalorder %s3472_s22, %s3038_s30  ;;  %p3043_p9 = scmp.lt.u32.totalorder %s3472_s22, %s3531_s11 }
 0x37e   : > { %p3044_p10 = scmp.lt.u32.totalorder %s3042_s0, %s3038_s30  ;;  %p3046_p12 = scmp.lt.u32.totalorder %s3038_s30, %s3472_s22 }
 0x37f   : > { %p3040_p7 = pnand %p3039_p4, %p3191_p5 }
 0x380   : > { %p3045_p11 = por %p3044_p10, %p3043_p9 }
 0x381   : > { %p3041_p8 = pneg %p3040_p7 }
 0x382   : > { %p3047_p13 = por %p3046_p12, %p3045_p11 }
 0x384   : > { %p3048_p0 = pnand %p3047_p13, %p3041_p8 }
 0x386   : > { %3051 = shalt.err (!%p3048_p0)
}
 0x387   : > { %2942 = dma.vmem_to_hbm [thread:$0]  (%p3191_p5), %s2373_s24, 128, %s3472_s22, %s2356_s29   ;;  %v2494_v23 = vld [vmem:[%s3529_s9] ss:$0 sm:$0xff]  ;;  %vm2349_vm11 = vcmask 15360  }
 0x388   : > { %p416_p1 = scmp.lt.s32.totalorder %s3174_s21, 1 }
 0x38a   : > { %s3549_s21 = smov (!%p416_p1, %s3174_s21), 1 }
 0x38b   : > { %s2476_s2 = sshll.u32 %s3549_s21, 3 }
 0x38c   : > { %s419_s30 = scalar_lea.vmem %s3530_s10, %s2476_s2 }
 0x44d   : > { %v2345_v27 = vpop.f32.mrb[2].mxu1 }
 0x44e   : > { %v2913_v16 = vadd.f32 %v2494_v23, %v2345_v27  ;;  %v2801_v17 = vpop.f32.mrb[3].mxu1 }
 0x450   : > { %2350 = vst.msk [vmem:[%s419_s30] sm:$0xff] %vm2349_vm11, %v2913_v16 }
 0x451 PF: > { %p2948_p5 = scmp.ge.s32.totalorder %s3086_s20, 2  ;;  %s2391_s27 = sand.u32 1, %s3074_s17  }
 0x452   : > { %s2392_s21 = scalar_lea.sflag [#allocation3], %s2391_s27 }
 0x453   : > { %p2945_p2 = pnand %p2948_p5, %p3195_p6 }
 0x455   : > { %3069 = dma.done.wait (!%p2945_p2), %s2392_s21, 128  }
 0x456   : > { %3071 = vsyncadd (!%p2945_p2), %s2392_s21, 4294967168  ;;  %p22_p3 = scmp.ge.s32.totalorder %s3178_s23, 4   ;;  %s3542_s17 = smov %s3078_s18 }
 0x457   : > { %s3543_s18 = smov %s3082_s19  ;;  %s3544_s19 = smov %s3189_s26 }
 0x458   : > { %s3545_s20 = smov %s3178_s23  ;;  %24 = sbr.rel (!%p22_p3) target bundleno = 7 (0x7), region = 110 }
 0x45f   :  { %2397 = vsyncpa [#allocation3], 1 }
 0x460   :  { %2399 = vsyncpa [#allocation3 + $0x1], 1 }

</bundles_post_ra>
